<compile_context>
chip_gen: v6e
topology: v6e:2x2x1
jax: 0.10.0
libtpu: 0.0.40
codegen_flags: <defaults>
</compile_context>

<pallas_src>
import jax
import jax.numpy as jnp
from jax.experimental import pallas as pl
from jax.experimental.pallas import tpu as pltpu


def _round_up(x: int, m: int) -> int:
    return ((x + m - 1) // m) * m


def _fc_kernel(x_ref, w_ref, b_ref, out_ref):
    # x_ref:   (TB, F)  tile of bags
    # w_ref:   (F, K)   resident fc weight, already transposed to (in, out)
    # b_ref:   (1, K)   resident fc bias row
    # out_ref: (TB, K)  logits tile (natural width, no lane padding)
    out_ref[...] = (
        jnp.dot(x_ref[...], w_ref[...], preferred_element_type=jnp.float32)
        + b_ref[...]
    ).astype(out_ref.dtype)


def prepare_fclayer_params(w_fc, b_fc):
    """One-time parameter prep (hoisted out of the per-call path).

    Converts the PyTorch nn.Linear weight layout (out_size, in_size) to the
    (in_size, out_size) layout the kernel consumes and reshapes the bias to a
    (1, out_size) row.  Call once at init / param load, not every forward.
    """
    w_t = jnp.asarray(w_fc).T              # (in_size, out_size)
    b_row = jnp.asarray(b_fc).reshape(1, -1)
    return w_t, b_row


def _pick_block_batch(n: int, f: int) -> int:
    if n <= 8:
        return max(n, 1)                   # single full block, no partials
    # Large tiles amortize the ~600-cycle per-step cost, but keep >=2 grid
    # steps so the "parallel" axis can be sharded across v7x's two TCs.
    target = min(1024, _round_up(pl.cdiv(n, 2), 8))
    # Cap so double-buffered feats tiles (2 * bb * F * 4 B) stay under ~32 MiB.
    vmem_cap = max(8, (((32 << 20) // (2 * f * 4)) // 8) * 8)
    return max(8, min(target, vmem_cap))


def fclayer_forward(feats, w_t, b_row, *, block_batch=None):
    """Pallas implementation of FCLayer.forward.

    Args:
      feats: (N, in_size) input features.
      w_t:   (in_size, out_size) weight from prepare_fclayer_params.
      b_row: (1, out_size) bias from prepare_fclayer_params.
    Returns:
      (feats, x) with x = feats @ W.T + b of shape (N, out_size) — identical
      semantics to the PyTorch module.  feats is an identity pass-through and
      is returned directly instead of being copied through the kernel.
    """
    N, F = feats.shape
    K = w_t.shape[1]

    if block_batch is None:
        block_batch = _pick_block_batch(N, F)
    grid = (pl.cdiv(N, block_batch),)

    itemsize = jnp.dtype(feats.dtype).itemsize
    cost = pl.CostEstimate(
        flops=2 * N * F * K,
        transcendentals=0,
        bytes_accessed=(N * F * itemsize + F * K * itemsize
                        + N * K * itemsize + K * itemsize),
    )

    x = pl.pallas_call(
        _fc_kernel,
        out_shape=jax.ShapeDtypeStruct((N, K), feats.dtype),
        grid_spec=pltpu.PrefetchScalarGridSpec(
            num_scalar_prefetch=0,
            grid=grid,
            in_specs=[
                # feats tile; ragged final block handled by Pallas (no pad).
                pl.BlockSpec((block_batch, F), lambda n: (n, 0)),
                # Grid-invariant weight / bias: resident, single-buffered.
                pl.BlockSpec((F, K), lambda n: (0, 0),
                             pipeline_mode=pl.Buffered(1)),
                pl.BlockSpec((1, K), lambda n: (0, 0),
                             pipeline_mode=pl.Buffered(1)),
            ],
            out_specs=pl.BlockSpec((block_batch, K), lambda n: (n, 0)),
        ),
        compiler_params=pltpu.CompilerParams(
            dimension_semantics=("parallel",),
            vmem_limit_bytes=48 << 20,
        ),
        cost_estimate=cost,
    )(feats, w_t, b_row)

    return feats, x


def _reference_forward(feats, w_fc, b_fc):
    # Pure-JAX reference of FCLayer.forward.
    return feats, feats @ w_fc.T + b_fc


if __name__ == "__main__":
    key = jax.random.PRNGKey(0)
    kx, kw, kb, kx2 = jax.random.split(key, 4)

    # --- Small shapes consistent with the module: bags N=2, in_size=32,
    # --- out_size=1 (the module default). -----------------------------------
    N, IN_SIZE, OUT_SIZE = 2, 32, 1

    feats_in = jax.random.normal(kx, (N, IN_SIZE), dtype=jnp.float32)
    w_fc = jax.random.normal(kw, (OUT_SIZE, IN_SIZE),
                             jnp.float32) / jnp.sqrt(IN_SIZE)
    b_fc = jax.random.normal(kb, (OUT_SIZE,), jnp.float32) * 0.01

    w_t, b_row = prepare_fclayer_params(w_fc, b_fc)   # once, at init

    feats, x = fclayer_forward(feats_in, w_t, b_row)
    jax.block_until_ready((feats, x))

    feats_ref, x_ref = _reference_forward(feats_in, w_fc, b_fc)
    assert feats.shape == (N, IN_SIZE) and x.shape == (N, OUT_SIZE)
    assert jnp.allclose(feats, feats_ref, atol=1e-6, rtol=1e-6)
    assert jnp.allclose(x, x_ref, atol=1e-5, rtol=1e-5)

    # --- Ragged multi-step grid check (partial final block, no padding). ----
    N2, F2 = 300, 128
    feats2 = jax.random.normal(kx2, (N2, F2), dtype=jnp.float32)
    w2 = jax.random.normal(kw, (OUT_SIZE, F2), jnp.float32) / jnp.sqrt(F2)
    b2 = jax.random.normal(kb, (OUT_SIZE,), jnp.float32) * 0.01
    w2_t, b2_row = prepare_fclayer_params(w2, b2)

    _, x2 = fclayer_forward(feats2, w2_t, b2_row)
    jax.block_until_ready(x2)
    _, x2_ref = _reference_forward(feats2, w2, b2)
    assert x2.shape == (N2, OUT_SIZE)
    assert jnp.allclose(x2, x2_ref, atol=1e-3, rtol=1e-3)

    print("KERNEL_OK")
</pallas_src>

<mosaic_0001>
module attributes {stable_mosaic.version = 11 : i64} {
  func.func @_fc_kernel(%arg0: i32, %arg1: memref<2x32xf32, #tpu.memory_space<vmem>>, %arg2: memref<32x1xf32, #tpu.memory_space<vmem>>, %arg3: memref<1x1xf32, #tpu.memory_space<vmem>>, %arg4: memref<2x1xf32, #tpu.memory_space<vmem>>) attributes {dimension_semantics = [#tpu.dimension_semantics<parallel>], iteration_bounds = array<i64: 1>, scalar_prefetch = 0 : i64, scratch_operands = 0 : i64, tpu.core_type = #tpu.core_type<tc>, window_params = [{transform_indices = @transform_0, window_bounds = array<i64: 2, 32>}, {pipeline_mode = #tpu.pipeline_mode<synchronous>, transform_indices = @transform_1, window_bounds = array<i64: 32, 1>}, {pipeline_mode = #tpu.pipeline_mode<synchronous>, transform_indices = @transform_2, window_bounds = array<i64: 1, 1>}, {transform_indices = @transform_3, window_bounds = array<i64: 2, 1>}]} {
    %c0 = arith.constant 0 : index
    %c0_0 = arith.constant 0 : index
    %0 = vector.load %arg1[%c0, %c0_0] : memref<2x32xf32, #tpu.memory_space<vmem>>, vector<2x32xf32>
    %c0_1 = arith.constant 0 : index
    %c0_2 = arith.constant 0 : index
    %1 = vector.load %arg2[%c0_1, %c0_2] : memref<32x1xf32, #tpu.memory_space<vmem>>, vector<32x1xf32>
    %cst = arith.constant dense<0.000000e+00> : vector<2x1xf32>
    %2 = tpu.matmul %0, %1, %cst {dimension_numbers = #tpu.dot_dimension_numbers<[1], [0], [0], [1], [0, 0, 1, 1], [], []>} : vector<2x32xf32>, vector<32x1xf32>, vector<2x1xf32> -> vector<2x1xf32>
    %c0_3 = arith.constant 0 : index
    %c0_4 = arith.constant 0 : index
    %3 = vector.load %arg3[%c0_3, %c0_4] : memref<1x1xf32, #tpu.memory_space<vmem>>, vector<1x1xf32>
    %4 = vector.broadcast %3 : vector<1x1xf32> to vector<2x1xf32>
    %5 = arith.addf %2, %4 : vector<2x1xf32>
    %c0_5 = arith.constant 0 : index
    %c0_6 = arith.constant 0 : index
    %6 = vector.load %arg4[%c0_5, %c0_6] : memref<2x1xf32, #tpu.memory_space<vmem>>, vector<2x1xf32>
    tpu.vector_store %arg4[%c0_5, %c0_6], %5 {strides = array<i32>} : memref<2x1xf32, #tpu.memory_space<vmem>>, vector<2x1xf32>,
    return
  }
  func.func @transform_0(%arg0: i32) -> (i32, i32) {
    %c0_i32 = arith.constant 0 : i32
    %c0_i32_0 = arith.constant 0 : i32
    return %arg0, %c0_i32 : i32, i32
  }
  func.func @transform_1(%arg0: i32) -> (i32, i32) {
    %c0_i32 = arith.constant 0 : i32
    %c0_i32_0 = arith.constant 0 : i32
    %c0_i32_1 = arith.constant 0 : i32
    return %c0_i32, %c0_i32_0 : i32, i32
  }
  func.func @transform_2(%arg0: i32) -> (i32, i32) {
    %c0_i32 = arith.constant 0 : i32
    %c0_i32_0 = arith.constant 0 : i32
    %c0_i32_1 = arith.constant 0 : i32
    return %c0_i32, %c0_i32_0 : i32, i32
  }
  func.func @transform_3(%arg0: i32) -> (i32, i32) {
    %c0_i32 = arith.constant 0 : i32
    %c0_i32_0 = arith.constant 0 : i32
    return %arg0, %c0_i32 : i32, i32
  }
}

</mosaic_0001>

<bundles_post_ra>
// kernel: tpu_custom_call.1
= control target key start
LH: loop header
LB: loop body
LE: loop exit
PB: predicated region body
PF: predicated region fallthrough
CT: control target
= control target key end

     0   :  { %v128_v0 = vmov 0.0   ;;  %vm129_vm0 = vmmov 0   ;;  %vm28_vm1 = vcmask 261120   ;;  %vm102_vm2 = vcmask 1024   ;;  %s171_s1 = inlined_call_operand.vmem [shape: f32[32,1], index: 1, kind: input, shape index: {}]   ;;  %s172_s2 = inlined_call_operand.<no memory space> [shape: f32[1,1], index: 2, kind: input, shape index: {}]   ;;  %s173_s0 = inlined_call_operand.vmem [shape: f32[2,32], index: 0, kind: input, shape index: {}]   ;;  %s174_s3 = inlined_call_operand.vmem [shape: f32[2,1], index: 3, kind: output, shape index: {}]  }
   0x1   :  { %115 = vmatprep.subr.mxu0 %v128_v0  ;;  %v20_v1 = vld [vmem:[%s171_s1 + $0x18] sm:$0xff]  ;;  %v19_v2 = vld [vmem:[%s171_s1 + $0x10] sm:$0xff]  ;;  %123 = vmatprep.mubr.msk.f32.mxu0 %vm129_vm0, %v128_v0  ;;  %v8_v3 = vstv %s172_s2  ;;  %v18_v4 = vld [vmem:[%s171_s1 + $0x8] sm:$0xff] }
   0x2   :  { %116 = vmatpush3.msra.mxu0 %v20_v1  ;;  %9 = vst [vmem:[#allocation2] sm:$0x1] %v8_v3  ;;  %v17_v5 = vld [vmem:[%s171_s1] sm:$0xff] }
   0x3   :  { %117 = vmatprep.subr.mxu0 %v128_v0  ;;  %v16_v6 = vld [vmem:[%s173_s0] sm:$0x3] }
   0x4   :  { %118 = vmatpush3.msra.mxu0 %v19_v2 }
   0x5   :  { %119 = vmatprep.subr.mxu0 %v128_v0 }
   0x6   :  { %120 = vmatpush3.msra.mxu0 %v18_v4 }
   0x7   :  { %121 = vmatprep.subr.mxu0 %v128_v0 }
   0x8   :  { %122 = vmatpush3.msra.mxu0 %v17_v5 }
   0x9   :  { %124 = vmatmul.mubr.msk.f32.vlgmr.msra.gmra.mxu0 %vm28_vm1, %v16_v6  ;;  %v108_v7 = vld [vmem:[#allocation2] ss:$0 sm:$0xff] }
  0xc9   :  { %v98_v8 = vpop.f32.mrf.mxu0 }
  0xca   :  { %v99_v9 = vadd.f32 %v108_v7, %v98_v8 }
  0xcb   :  { %v125_v10 = vpop.f32.mrf.mxu0 }
  0xcc   :  { %103 = vst.msk [vmem:[%s174_s3] sm:$0x3] %vm102_vm2, %v99_v9 }

</bundles_post_ra>
